<compile_context>
chip_gen: v7x
topology: tpu7x:2x2x1
jax: 0.10.0
libtpu: 0.0.40
codegen_flags: <defaults>
</compile_context>

<pallas_src>
import jax
import jax.numpy as jnp
from jax.experimental import pallas as pl
from jax.experimental.pallas import tpu as pltpu


_TARGET_BLOCK_BYTES = 4 * 1024 * 1024   # per-block f32 working-set target
_MAX_TB = 1024                          # row-block cap (85-86% of HBM roofline)
_VMEM_LIMIT_BYTES = 32 * 1024 * 1024    # safe on v5e / v6e / v7x


# ----------------------------------------------------------------------------
# Kernels
# ----------------------------------------------------------------------------
def _stats_kernel(x_ref, sum_ref, sq_ref):
    """Accumulate per-lane column sums / squared sums over the row-block grid."""
    @pl.when(pl.program_id(0) == 0)
    def _():
        sum_ref[...] = jnp.zeros_like(sum_ref)
        sq_ref[...] = jnp.zeros_like(sq_ref)

    x = x_ref[...].astype(jnp.float32)                    # (TB, L)
    sum_ref[...] += jnp.sum(x, axis=0, keepdims=True)     # (1, L)
    sq_ref[...] += jnp.sum(x * x, axis=0, keepdims=True)  # (1, L)


def _normalize_kernel(x_ref, mean_ref, inv_std_ref, out_ref):
    """out = (x - mean) * inv_std; mean / inv_std are precomputed (1, L) rows."""
    x = x_ref[...].astype(jnp.float32)                    # (TB, L)
    out_ref[...] = ((x - mean_ref[...]) * inv_std_ref[...]).astype(out_ref.dtype)


# ----------------------------------------------------------------------------
# Layout planning / wrappers
# ----------------------------------------------------------------------------
def _round_up(x, m):
    return (x + m - 1) // m * m


def _plan_layout(B, D):
    """Pick a lane-dense slab view (rows, L) and a row-block size TB."""
    if D % 128 == 0:
        L, R = D, 1                       # already lane dense
    elif 128 % D == 0:
        L, R = 128, 128 // D              # pack R batch rows per slab row
    else:
        L, R = D, 1                       # lane-sparse fallback (still correct)
    rows0 = -(-B // R)                    # ceil(B / R)
    rows_min = _round_up(max(rows0, 1), 8)
    tb_cap = max(8, (_TARGET_BLOCK_BYTES // (L * 4)) // 8 * 8)
    tb = min(_MAX_TB, tb_cap, rows_min)
    rows = _round_up(rows0, tb)
    return L, R, tb, rows


def _to_slab(batch, L, R, rows):
    B, D = batch.shape
    pad = rows * R - B
    x = jnp.pad(batch, ((0, pad), (0, 0))) if pad else batch
    return x.reshape(rows, L)             # slab row r = batch rows [r*R, (r+1)*R)


def _batch_column_sums(x_slab, L, R, D, tb, rows, itemsize):
    grid = (rows // tb,)
    psum, psq = pl.pallas_call(
        _stats_kernel,
        out_shape=(jax.ShapeDtypeStruct((1, L), jnp.float32),
                   jax.ShapeDtypeStruct((1, L), jnp.float32)),
        grid=grid,
        in_specs=[pl.BlockSpec((tb, L), lambda i: (i, 0))],
        out_specs=(pl.BlockSpec((1, L), lambda i: (0, 0)),
                   pl.BlockSpec((1, L), lambda i: (0, 0))),
        compiler_params=pltpu.CompilerParams(
            dimension_semantics=("arbitrary",),
            vmem_limit_bytes=_VMEM_LIMIT_BYTES),
        cost_estimate=pl.CostEstimate(
            flops=3 * rows * L,
            transcendentals=0,
            bytes_accessed=rows * L * itemsize + 2 * L * 4),
    )(x_slab)
    # Fold the R interleaved copies back to per-feature (D,) sums.
    return psum.reshape(R, D).sum(axis=0), psq.reshape(R, D).sum(axis=0)


def _normalize(x_slab, mean_t, inv_std_t, out_dtype, L, tb, rows, itemsize):
    grid = (rows // tb,)
    return pl.pallas_call(
        _normalize_kernel,
        out_shape=jax.ShapeDtypeStruct((rows, L), out_dtype),
        grid=grid,
        in_specs=[pl.BlockSpec((tb, L), lambda i: (i, 0)),
                  pl.BlockSpec((1, L), lambda i: (0, 0)),
                  pl.BlockSpec((1, L), lambda i: (0, 0))],
        out_specs=pl.BlockSpec((tb, L), lambda i: (i, 0)),
        compiler_params=pltpu.CompilerParams(
            dimension_semantics=("parallel",),
            vmem_limit_bytes=_VMEM_LIMIT_BYTES),
        cost_estimate=pl.CostEstimate(
            flops=2 * rows * L,
            transcendentals=0,
            bytes_accessed=2 * rows * L * itemsize + 2 * L * 4),
    )(x_slab, mean_t, inv_std_t)


def accumulated_normalization(batch, acc_sum, acc_squared_sum, acc_count,
                              num_accumulations, *, training=True,
                              epsilon=1e-8):
    """Functional forward of AccumulatedNormalization.

    Returns:
      training=True : (out, new_acc_sum, new_acc_squared_sum,
                       new_acc_count, new_num_accumulations)
      training=False: out
    """
    B, D = batch.shape
    itemsize = jnp.dtype(batch.dtype).itemsize
    L, R, tb, rows = _plan_layout(B, D)
    x_slab = _to_slab(batch, L, R, rows)

    acc_sum_f = acc_sum.astype(jnp.float32).reshape(D)
    acc_sq_f = acc_squared_sum.astype(jnp.float32).reshape(D)
    acc_count_f = acc_count.astype(jnp.float32).reshape(1)
    num_acc_f = num_accumulations.astype(jnp.float32).reshape(1)

    if training:
        # update_statistics(batch): heavy column reduction in Pallas, tiny
        # (D,)/scalar buffer bookkeeping in plain JAX.
        bsum, bsq = _batch_column_sums(x_slab, L, R, D, tb, rows, itemsize)
        acc_sum_f = acc_sum_f + bsum
        acc_sq_f = acc_sq_f + bsq
        acc_count_f = acc_count_f + jnp.float32(B)
        num_acc_f = num_acc_f + jnp.float32(1.0)

    # Tiny (D,)-sized statistic math done once in the wrapper (exact torch
    # formulas: std = clamp(sqrt(E[x^2] - E[x]^2), min=eps)).
    cnt_safe = jnp.maximum(acc_count_f[0], jnp.float32(1.0))
    mean = acc_sum_f / cnt_safe                               # E[x]   (D,)
    var = acc_sq_f / cnt_safe - mean * mean                   # (D,)
    std = jnp.maximum(jnp.sqrt(var), jnp.float32(epsilon))
    inv_std = 1.0 / std
    mean_t = jnp.tile(mean.reshape(1, D), (1, R))             # (1, L) lane-aligned
    inv_std_t = jnp.tile(inv_std.reshape(1, D), (1, R))       # (1, L)

    out_slab = _normalize(x_slab, mean_t, inv_std_t, batch.dtype, L, tb, rows,
                          itemsize)
    out = out_slab.reshape(rows * R, D)[:B]

    if training:
        return out, acc_sum_f, acc_sq_f, acc_count_f, num_acc_f
    return out


# ----------------------------------------------------------------------------
# Self-test
# ----------------------------------------------------------------------------
if __name__ == "__main__":
    EPS = 1e-8
    k1, k2, k3, k4 = jax.random.split(jax.random.PRNGKey(0), 4)

    def torch_reference(batch, acc_sum, acc_sq, acc_cnt, training):
        b = batch.astype(jnp.float32)
        if training:
            acc_sum = acc_sum + b.sum(axis=0)
            acc_sq = acc_sq + (b ** 2).sum(axis=0)
            acc_cnt = acc_cnt + jnp.float32(b.shape[0])
        cnt = jnp.maximum(acc_cnt, 1.0)
        mean = acc_sum / cnt
        std = jnp.maximum(jnp.sqrt(acc_sq / cnt - mean ** 2), EPS)
        return (b - mean) / std, acc_sum, acc_sq, acc_cnt

    # ---- config 1: small demo shape (B=8, D=32), lane-packed slab path ----
    B, D = 8, 32
    batch = jax.random.normal(k1, (B, D), dtype=jnp.float32)
    acc_sum = jnp.zeros((D,), jnp.float32)
    acc_sq = jnp.zeros((D,), jnp.float32)
    acc_cnt = jnp.zeros((1,), jnp.float32)
    n_acc = jnp.zeros((1,), jnp.float32)

    out, acc_sum, acc_sq, acc_cnt, n_acc = accumulated_normalization(
        batch, acc_sum, acc_sq, acc_cnt, n_acc, training=True, epsilon=EPS)
    jax.block_until_ready(out)

    ref_out, ref_sum, ref_sq, ref_cnt = torch_reference(
        batch, jnp.zeros((D,)), jnp.zeros((D,)), jnp.zeros((1,)), True)
    assert jnp.allclose(out, ref_out, atol=1e-5, rtol=1e-5)
    assert jnp.allclose(acc_sum, ref_sum, atol=1e-5, rtol=1e-5)
    assert jnp.allclose(acc_sq, ref_sq, atol=1e-5, rtol=1e-5)
    assert jnp.allclose(acc_cnt, jnp.array([float(B)]))
    assert jnp.allclose(n_acc, jnp.array([1.0]))

    # eval-mode forward with the updated buffers (no stat update)
    out_eval = accumulated_normalization(batch, acc_sum, acc_sq, acc_cnt,
                                         n_acc, training=False, epsilon=EPS)
    jax.block_until_ready(out_eval)
    assert jnp.allclose(out_eval, ref_out, atol=1e-5, rtol=1e-5)

    # ---- config 2: multi-block grid, lane-dense D (B=1000, D=256) ---------
    B2, D2 = 1000, 256
    prev = jax.random.normal(k2, (64, D2), dtype=jnp.float32)
    acc_sum2 = prev.sum(axis=0)
    acc_sq2 = (prev ** 2).sum(axis=0)
    acc_cnt2 = jnp.array([64.0], jnp.float32)
    n_acc2 = jnp.array([1.0], jnp.float32)
    batch2 = jax.random.normal(k3, (B2, D2), dtype=jnp.float32)

    out2, nsum2, nsq2, ncnt2, nnacc2 = accumulated_normalization(
        batch2, acc_sum2, acc_sq2, acc_cnt2, n_acc2, training=True,
        epsilon=EPS)
    jax.block_until_ready(out2)

    ref_out2, ref_sum2, ref_sq2, ref_cnt2 = torch_reference(
        batch2, acc_sum2, acc_sq2, acc_cnt2, True)
    assert jnp.allclose(out2, ref_out2, atol=1e-4, rtol=1e-4)
    assert jnp.allclose(nsum2, ref_sum2, atol=1e-3, rtol=5e-4)
    assert jnp.allclose(nsq2, ref_sq2, atol=1e-3, rtol=5e-4)
    assert jnp.allclose(ncnt2, ref_cnt2)
    assert jnp.allclose(nnacc2, jnp.array([2.0]))

    # ---- config 3: lane-sparse fallback (D=48 neither divides nor is x128) -
    B3, D3 = 20, 48
    batch3 = jax.random.normal(k4, (B3, D3), dtype=jnp.float32)
    out3, nsum3, nsq3, ncnt3, nnacc3 = accumulated_normalization(
        batch3, jnp.zeros((D3,)), jnp.zeros((D3,)), jnp.zeros((1,)),
        jnp.zeros((1,)), training=True, epsilon=EPS)
    jax.block_until_ready(out3)

    ref_out3, ref_sum3, _, _ = torch_reference(
        batch3, jnp.zeros((D3,)), jnp.zeros((D3,)), jnp.zeros((1,)), True)
    assert jnp.allclose(out3, ref_out3, atol=1e-5, rtol=1e-5)
    assert jnp.allclose(nsum3, ref_sum3, atol=1e-5, rtol=1e-5)
    assert jnp.allclose(ncnt3, jnp.array([float(B3)]))

    print("KERNEL_OK")
</pallas_src>

<mosaic_0001>
module attributes {stable_mosaic.version = 11 : i64} {
  func.func @_stats_kernel(%arg0: i32, %arg1: memref<8x128xf32, #tpu.memory_space<vmem>>, %arg2: memref<1x128xf32, #tpu.memory_space<vmem>>, %arg3: memref<1x128xf32, #tpu.memory_space<vmem>>) attributes {dimension_semantics = [#tpu.dimension_semantics<arbitrary>], iteration_bounds = array<i64: 1>, scalar_prefetch = 0 : i64, scratch_operands = 0 : i64, tpu.core_type = #tpu.core_type<tc>, window_params = [{transform_indices = @transform_0, window_bounds = array<i64: 8, 128>}, {pipeline_mode = #tpu.pipeline_mode<synchronous>, transform_indices = @transform_1, window_bounds = array<i64: 1, 128>}, {pipeline_mode = #tpu.pipeline_mode<synchronous>, transform_indices = @transform_2, window_bounds = array<i64: 1, 128>}]} {
    %c0_i32 = arith.constant 0 : i32
    %0 = arith.cmpi eq, %arg0, %c0_i32 : i32
    %1 = arith.extui %0 : i1 to i32
    %c0_i32_0 = arith.constant 0 : i32
    %2 = arith.cmpi ne, %1, %c0_i32_0 : i32
    scf.if %2 {
      %cst_11 = arith.constant 0.000000e+00 : f32
      %15 = vector.broadcast %cst_11 : f32 to vector<1x128xf32>
      %c0_12 = arith.constant 0 : index
      %c0_13 = arith.constant 0 : index
      %16 = vector.load %arg2[%c0_12, %c0_13] : memref<1x128xf32, #tpu.memory_space<vmem>>, vector<1x128xf32>
      tpu.vector_store %arg2[%c0_12, %c0_13], %15 {strides = array<i32>} : memref<1x128xf32, #tpu.memory_space<vmem>>, vector<1x128xf32>,
      %cst_14 = arith.constant 0.000000e+00 : f32
      %17 = vector.broadcast %cst_14 : f32 to vector<1x128xf32>
      %c0_15 = arith.constant 0 : index
      %c0_16 = arith.constant 0 : index
      %18 = vector.load %arg3[%c0_15, %c0_16] : memref<1x128xf32, #tpu.memory_space<vmem>>, vector<1x128xf32>
      tpu.vector_store %arg3[%c0_15, %c0_16], %17 {strides = array<i32>} : memref<1x128xf32, #tpu.memory_space<vmem>>, vector<1x128xf32>,
    } else {
    }
    %c0 = arith.constant 0 : index
    %c0_1 = arith.constant 0 : index
    %3 = vector.load %arg1[%c0, %c0_1] : memref<8x128xf32, #tpu.memory_space<vmem>>, vector<8x128xf32>
    %c0_2 = arith.constant 0 : index
    %c0_3 = arith.constant 0 : index
    %4 = vector.load %arg2[%c0_2, %c0_3] : memref<1x128xf32, #tpu.memory_space<vmem>>, vector<1x128xf32>
    %cst = arith.constant dense<0.000000e+00> : vector<128xf32>
    %5 = vector.multi_reduction <add>, %3, %cst [0] : vector<8x128xf32> to vector<128xf32>
    %6 = vector.shape_cast %5 : vector<128xf32> to vector<1x128xf32>
    %7 = arith.addf %4, %6 : vector<1x128xf32>
    %c0_4 = arith.constant 0 : index
    %c0_5 = arith.constant 0 : index
    %8 = vector.load %arg2[%c0_4, %c0_5] : memref<1x128xf32, #tpu.memory_space<vmem>>, vector<1x128xf32>
    tpu.vector_store %arg2[%c0_4, %c0_5], %7 {strides = array<i32>} : memref<1x128xf32, #tpu.memory_space<vmem>>, vector<1x128xf32>,
    %c0_6 = arith.constant 0 : index
    %c0_7 = arith.constant 0 : index
    %9 = vector.load %arg3[%c0_6, %c0_7] : memref<1x128xf32, #tpu.memory_space<vmem>>, vector<1x128xf32>
    %10 = arith.mulf %3, %3 : vector<8x128xf32>
    %cst_8 = arith.constant dense<0.000000e+00> : vector<128xf32>
    %11 = vector.multi_reduction <add>, %10, %cst_8 [0] : vector<8x128xf32> to vector<128xf32>
    %12 = vector.shape_cast %11 : vector<128xf32> to vector<1x128xf32>
    %13 = arith.addf %9, %12 : vector<1x128xf32>
    %c0_9 = arith.constant 0 : index
    %c0_10 = arith.constant 0 : index
    %14 = vector.load %arg3[%c0_9, %c0_10] : memref<1x128xf32, #tpu.memory_space<vmem>>, vector<1x128xf32>
    tpu.vector_store %arg3[%c0_9, %c0_10], %13 {strides = array<i32>} : memref<1x128xf32, #tpu.memory_space<vmem>>, vector<1x128xf32>,
    return
  }
  func.func @transform_0(%arg0: i32) -> (i32, i32) {
    %c0_i32 = arith.constant 0 : i32
    %c0_i32_0 = arith.constant 0 : i32
    return %arg0, %c0_i32 : i32, i32
  }
  func.func @transform_1(%arg0: i32) -> (i32, i32) {
    %c0_i32 = arith.constant 0 : i32
    %c0_i32_0 = arith.constant 0 : i32
    %c0_i32_1 = arith.constant 0 : i32
    return %c0_i32, %c0_i32_0 : i32, i32
  }
  func.func @transform_2(%arg0: i32) -> (i32, i32) {
    %c0_i32 = arith.constant 0 : i32
    %c0_i32_0 = arith.constant 0 : i32
    %c0_i32_1 = arith.constant 0 : i32
    return %c0_i32, %c0_i32_0 : i32, i32
  }
}

</mosaic_0001>

<bundles_post_ra>
// kernel: tpu_custom_call.1
= control target key start
LH: loop header
LB: loop body
LE: loop exit
PB: predicated region body
PF: predicated region fallthrough
CT: control target
= control target key end

     0   :  { %8 = vsyncpa [#allocation3], 0  ;;  %s218_s0 = inlined_call_operand.hbm [shape: f32[8,128], index: 0, kind: input, shape index: {}]   ;;  %s219_s1 = inlined_call_operand.hbm [shape: f32[1,128], index: 1, kind: output, shape index: {0}]   ;;  %s220_s2 = inlined_call_operand.hbm [shape: f32[1,128], index: 2, kind: output, shape index: {1}]  }
   0x1   :  { %9 = vsyncpa [#allocation4], 0 }
   0x2   :  { %10 = vsyncpa [#allocation7], 0  ;;  %s155_s9 = smov [#allocation2]   ;;  %s83_s13 = scalar_lea.hbm %s218_s0, 128 }
   0x3   :  { %s17_s10 = sshll.u32 %s155_s9, 4  ;;  %p84_p0 = scmp.ne.s32.totalorder %s218_s0, %s83_s13  ;;  %s18_s10 = int_to_ptr.vmem [resolvable:$true] %s17_s10 }
   0x4   :  { %p87_p1 = scmp.lt.u32.totalorder %s83_s13, %s218_s0 }
   0x6   :  { %p89_p2 = pnand %p87_p1, %p84_p0 }
   0x8   :  { %92 = shalt.err (!%p89_p2)
}
   0x9   :  { %s93_s18 = scalar_lea.vmem %s18_s10, 128  ;;  %p98_p4 = scmp.lt.s32.totalorder %s18_s10, %s18_s10 }
   0xa   :  { %p94_p3 = scmp.ne.s32.totalorder %s18_s10, %s93_s18  ;;  %p99_p5 = scmp.lt.s32.totalorder %s93_s18, %s93_s18 }
   0xc   :  { %p100_p6 = por %p99_p5, %p98_p4 }
   0xe   :  { %p101_p7 = pnand %p100_p6, %p94_p3 }
  0x10   :  { %104 = shalt.err (!%p101_p7)
}
  0x11   :  { %20 = dma.hbm_to_vmem [thread:$0]  %s218_s0, 128, %s18_s10, [#allocation3]  }
  0x12   :  { %149 = dma.done.wait [#allocation3], 128  }
  0x13   :  { %150 = vsyncadd [#allocation3], 4294967168  ;;  %v156_v0 = vmov 0.0   ;;  %v30_v1 = vld [vmem:[#allocation2] sm:$0xff]  ;;  %s157_s21 = smov [#allocation5]   ;;  %s158_s0 = smov [#allocation6]  }
  0x14   :  { %28 = vst [vmem:[#allocation5] sm:$0x1] %v156_v0  ;;  %29 = vst [vmem:[#allocation6] sm:$0x1] %v156_v0  ;;  %v32_v2 = vrot.slane %v30_v1, 4  ;;  %v41_v3 = vmul.f32 %v30_v1, %v30_v1  ;;  %s56_s22 = sshll.u32 %s157_s21, 4  ;;  %s57_s22 = int_to_ptr.vmem [resolvable:$true] %s56_s22 }
  0x15   :  { %s66_s23 = sshll.u32 %s158_s0, 4  ;;  %s105_s24 = scalar_lea.vmem %s57_s22, 16  ;;  %s186_s23 = int_to_ptr.vmem [resolvable:$true] %s66_s23 }
  0x16   :  { %v33_v4 = vadd.f32 %v32_v2, %v30_v1  ;;  %v42_v5 = vrot.slane %v41_v3, 4  ;;  %p106_p8 = scmp.ne.s32.totalorder %s57_s22, %s105_s24  ;;  %s109_s25 = scalar_lea.vmem %s57_s22, 32 }
  0x17   :  { %p110_p9 = scmp.lt.s32.totalorder %s57_s22, %s57_s22  ;;  %p111_p10 = scmp.lt.s32.totalorder %s109_s25, %s105_s24 }
  0x18   :  { %v34_v6 = vrot.slane %v33_v4, 2  ;;  %v43_v7 = vadd.f32 %v42_v5, %v41_v3 }
  0x19   :  { %p112_p11 = por %p111_p10, %p110_p9 }
  0x1a   :  { %v35_v8 = vadd.f32 %v34_v6, %v33_v4  ;;  %v44_v9 = vrot.slane %v43_v7, 2 }
  0x1b   :  { %v31_v12 = vld [vmem:[#allocation5] sm:$0x1]  ;;  %v40_v15 = vld [vmem:[#allocation6] sm:$0x1]  ;;  %p113_p12 = pnand %p112_p11, %p106_p8 }
  0x1c   :  { %v36_v10 = vrot.slane %v35_v8, 1  ;;  %v45_v11 = vadd.f32 %v44_v9, %v43_v7 }
  0x1e   :  { %v37_v13 = vadd.f32 %v36_v10, %v35_v8  ;;  %v46_v14 = vrot.slane %v45_v11, 1 }
  0x20   :  { %v38_v16 = vadd.f32 %v37_v13, %v31_v12  ;;  %v47_v17 = vadd.f32 %v46_v14, %v45_v11 }
  0x22   :  { %39 = vst [vmem:[#allocation5] sm:$0x1] %v38_v16  ;;  %v48_v18 = vadd.f32 %v47_v17, %v40_v15 }
  0x23   :  { %116 = shalt.err (!%p113_p12)
}
  0x24   :  { %s117_s28 = scalar_lea.hbm %s219_s1, 16 }
  0x25   :  { %p118_p13 = scmp.ne.s32.totalorder %s219_s1, %s117_s28  ;;  %p121_p0 = scmp.lt.u32.totalorder %s117_s28, %s219_s1 }
  0x27   :  { %p123_p1 = pnand %p121_p0, %p118_p13 }
  0x29   :  { %126 = shalt.err (!%p123_p1)
}
  0x2a   :  { %59 = dma.vmem_to_hbm [thread:$0]  %s57_s22, 16, %s219_s1, [#allocation4]   ;;  %49 = vst [vmem:[#allocation6] sm:$0x1] %v48_v18 }
  0x2b   :  { %s127_s7 = scalar_lea.vmem %s186_s23, 16  ;;  %s131_s8 = scalar_lea.vmem %s186_s23, 32 }
  0x2c   :  { %p128_p2 = scmp.ne.s32.totalorder %s186_s23, %s127_s7  ;;  %p132_p3 = scmp.lt.s32.totalorder %s186_s23, %s186_s23 }
  0x2d   :  { %p133_p4 = scmp.lt.s32.totalorder %s131_s8, %s127_s7 }
  0x2f   :  { %p134_p5 = por %p133_p4, %p132_p3 }
  0x31   :  { %p135_p6 = pnand %p134_p5, %p128_p2 }
  0x33   :  { %138 = shalt.err (!%p135_p6)
}
  0x34   :  { %s139_s11 = scalar_lea.hbm %s220_s2, 16 }
  0x35   :  { %p140_p7 = scmp.ne.s32.totalorder %s220_s2, %s139_s11  ;;  %p143_p8 = scmp.lt.u32.totalorder %s139_s11, %s220_s2 }
  0x37   :  { %p145_p9 = pnand %p143_p8, %p140_p7 }
  0x39   :  { %148 = shalt.err (!%p145_p9)
}
  0x3a   :  { %69 = dma.vmem_to_hbm [thread:$0]  %s186_s23, 16, %s220_s2, [#allocation7]  }
  0x3b   :  { %151 = dma.done.wait [#allocation4], 16  }
  0x3c   :  { %152 = vsyncadd [#allocation4], 4294967280 }
  0x3d   :  { %153 = dma.done.wait [#allocation7], 16  }
  0x3e   :  { %154 = vsyncadd [#allocation7], 4294967280 }
  0x3f   :  { %76 = vsyncpa [#allocation3], 1 }
  0x40   :  { %77 = vsyncpa [#allocation4], 1 }
  0x41   :  { %78 = vsyncpa [#allocation7], 1 }

</bundles_post_ra>
